<compile_context>
chip_gen: v7x
topology: tpu7x:2x2x1
jax: 0.10.0
libtpu: 0.0.40
codegen_flags: <defaults>
</compile_context>

<pallas_src>
import functools

import jax
import jax.numpy as jnp
from jax import lax
from jax.experimental import pallas as pl
from jax.experimental.pallas import tpu as pltpu


# ----------------------- config (synthetic, small) -----------------------
VOCAB_SIZE = 128          # lane-friendly small vocab
EMB_SIZE = 32
MAX_SEQ_LEN = 16
PAD_TOKEN_ID = 0
LAYER_NORM_EPS = 1e-12
BATCH = 2
SEQ = 8


def _round_up(x, m):
    return ((x + m - 1) // m) * m


def bert_embeddings_kernel(ids_ref, slab_ref, out_ref, *, vocab, k_pad, eps):
    """Fused multi-hot embedding gather + position add + LayerNorm.

    ids_ref  : (N, 2) int32  — column 0 = input_ids, column 1 = token_type_ids
    slab_ref : (k_pad + N + 2, C) f32 — packed parameter slab, rows:
                 [0      : vocab  )   word embedding table
                 [vocab  : vocab+2)   token-type embedding table (rows 0, 1)
                 [vocab+2: k_pad  )   zero padding (8-sublane alignment)
                 [k_pad  : k_pad+N)   position embeddings pre-tiled per token
                 [k_pad+N]            LayerNorm gamma
                 [k_pad+N+1]          LayerNorm beta
    out_ref  : (N, C) f32
    """
    n = out_ref.shape[0]

    ids = ids_ref[:, 0:1]                                      # (N, 1) int32
    tt = ids_ref[:, 1:2]                                       # (N, 1) int32

    # ---- word + token-type embeddings: multi-hot gather on the MXU ---------
    # Columns [0, vocab) hit the word row, columns [vocab, vocab+2) hit the
    # token-type row; padding rows are zero so stray matches contribute 0.
    # (token_type_ids > 1 therefore yield a zero type embedding instead of the
    #  PyTorch OOB index — acceptable divergence for {0, 1} inputs.)
    col = lax.broadcasted_iota(jnp.int32, (n, k_pad), 1)       # (N, K_pad)
    multi_hot = jnp.logical_or(col == ids,
                               col == tt + vocab).astype(jnp.float32)
    emb = jnp.dot(multi_hot, slab_ref[0:k_pad, :],
                  preferred_element_type=jnp.float32)          # (N, C)

    # ---- position embeddings: pre-tiled (N, C) rows, plain VPU add ---------
    emb = emb + slab_ref[k_pad:k_pad + n, :]                   # (N, C)

    # ---- LayerNorm (biased variance, eps inside rsqrt = nn.LayerNorm) ------
    mu = jnp.mean(emb, axis=-1, keepdims=True)
    var = jnp.mean((emb - mu) ** 2, axis=-1, keepdims=True)
    y = (emb - mu) * lax.rsqrt(var + eps)
    gamma = slab_ref[k_pad + n:k_pad + n + 1, :]               # (1, C)
    beta = slab_ref[k_pad + n + 1:k_pad + n + 2, :]            # (1, C)
    out_ref[...] = (y * gamma + beta).astype(out_ref.dtype)
    # TODO(synk): nn.Dropout skipped (inference / eval-mode no-op).


def bert_embeddings_forward(input_ids, token_type_ids, params):
    """Default-path forward: position_ids = arange(T), inputs_embeds = None."""
    # TODO(synk): explicit position_ids / inputs_embeds overrides not wired in;
    #             only the module's default buffer path is implemented.
    B, T = input_ids.shape
    word_table = jnp.asarray(params["word_emb"], jnp.float32)       # (V, C)
    pos_table = jnp.asarray(params["pos_emb"], jnp.float32)         # (S_max, C)
    tok_table = jnp.asarray(params["tok_type_emb"], jnp.float32)    # (2, C)
    gamma = jnp.asarray(params["ln_gamma"], jnp.float32)            # (C,)
    beta = jnp.asarray(params["ln_beta"], jnp.float32)              # (C,)
    V, C = word_table.shape
    N = B * T

    if token_type_ids is None:
        token_type_ids = jnp.zeros((B, T), dtype=jnp.int32)

    # ---- wrapper-side layout plumbing (all free in XLA) ---------------------
    # 1) ids + token types packed into one (N, 2) int32 channel.
    ids_packed = jnp.stack(
        [jnp.asarray(input_ids, jnp.int32).reshape(N),
         jnp.asarray(token_type_ids, jnp.int32).reshape(N)],
        axis=1)                                                      # (N, 2)

    # 2) all f32 parameters packed into one slab, sections 8-sublane aligned.
    k_pad = _round_up(V + 2, 8)
    pad_rows = jnp.zeros((k_pad - (V + 2), C), jnp.float32)
    pos_tiled = jnp.tile(pos_table[:T], (B, 1))                      # (N, C)
    slab = jnp.concatenate(
        [word_table, tok_table, pad_rows, pos_tiled,
         gamma[None, :], beta[None, :]], axis=0)                     # (k_pad+N+2, C)

    kernel = functools.partial(
        bert_embeddings_kernel, vocab=V, k_pad=k_pad, eps=LAYER_NORM_EPS,
    )

    cost = pl.CostEstimate(
        flops=2 * N * k_pad * C + 12 * N * C,
        transcendentals=N,  # rsqrt per row
        bytes_accessed=4 * (slab.shape[0] * C + 2 * N + N * C),
    )

    vmem = pl.BlockSpec(memory_space=pltpu.MemorySpace.VMEM)

    out2d = pl.pallas_call(
        kernel,
        out_shape=jax.ShapeDtypeStruct((N, C), jnp.float32),
        in_specs=[vmem, vmem],
        out_specs=vmem,
        cost_estimate=cost,
    )(ids_packed, slab)

    return out2d.reshape(B, T, C)


def init_params(key):
    V, C, S = VOCAB_SIZE, EMB_SIZE, MAX_SEQ_LEN
    ks = jax.random.split(key, 3)
    std = 0.02
    word = jax.random.normal(ks[0], (V, C)) * std
    word = word.at[PAD_TOKEN_ID].set(0.0)   # nn.Embedding(padding_idx=...) init
    p = {
        "word_emb": word,
        "pos_emb": jax.random.normal(ks[1], (S, C)) * std,
        "tok_type_emb": jax.random.normal(ks[2], (2, C)) * std,
        "ln_gamma": jnp.ones((C,)),
        "ln_beta": jnp.zeros((C,)),
    }
    return {k: jnp.asarray(v, jnp.float32) for k, v in p.items()}


if __name__ == "__main__":
    key = jax.random.PRNGKey(0)
    k_ids, k_params = jax.random.split(key)

    input_ids = jax.random.randint(k_ids, (BATCH, SEQ), 0, VOCAB_SIZE,
                                   dtype=jnp.int32)
    input_ids = input_ids.at[0, -1].set(PAD_TOKEN_ID)   # exercise the pad row
    token_type_ids = jnp.zeros((BATCH, SEQ), dtype=jnp.int32)
    token_type_ids = token_type_ids.at[1, SEQ // 2:].set(1)

    params = init_params(k_params)

    out = bert_embeddings_forward(input_ids, token_type_ids, params)
    out = jax.block_until_ready(out)

    assert out.shape == (BATCH, SEQ, EMB_SIZE)
    assert bool(jnp.all(jnp.isfinite(out)))
    print("KERNEL_OK")
</pallas_src>

<mosaic_0001>
module attributes {stable_mosaic.version = 11 : i64} {
  func.func @bert_embeddings_kernel(%arg0: memref<16x2xi32, #tpu.memory_space<vmem>>, %arg1: memref<154x32xf32, #tpu.memory_space<vmem>>, %arg2: memref<16x32xf32, #tpu.memory_space<vmem>>) attributes {dimension_semantics = [], scalar_prefetch = 0 : i64, scratch_operands = 0 : i64, tpu.core_type = #tpu.core_type<tc>} {
    %c0 = arith.constant 0 : index
    %c0_0 = arith.constant 0 : index
    %0 = vector.load %arg0[%c0, %c0_0] : memref<16x2xi32, #tpu.memory_space<vmem>>, vector<16x1xi32>
    %c0_1 = arith.constant 0 : index
    %c1 = arith.constant 1 : index
    %1 = vector.load %arg0[%c0_1, %c1] : memref<16x2xi32, #tpu.memory_space<vmem>>, vector<16x1xi32>
    %2 = tpu.iota {dimensions = array<i32: 1>} : vector<16x136xi32>
    %3 = vector.broadcast %0 : vector<16x1xi32> to vector<16x136xi32>
    %4 = arith.cmpi eq, %2, %3 : vector<16x136xi32>
    %c128_i32 = arith.constant 128 : i32
    %5 = vector.broadcast %c128_i32 : i32 to vector<16x1xi32>
    %6 = arith.addi %1, %5 : vector<16x1xi32>
    %7 = vector.broadcast %6 : vector<16x1xi32> to vector<16x136xi32>
    %8 = arith.cmpi eq, %2, %7 : vector<16x136xi32>
    %9 = arith.ori %4, %8 : vector<16x136xi1>
    %10 = arith.extui %9 : vector<16x136xi1> to vector<16x136xi32>
    %11 = arith.sitofp %10 : vector<16x136xi32> to vector<16x136xf32>
    %c0_2 = arith.constant 0 : index
    %c0_3 = arith.constant 0 : index
    %12 = vector.load %arg1[%c0_2, %c0_3] : memref<154x32xf32, #tpu.memory_space<vmem>>, vector<136x32xf32>
    %cst = arith.constant dense<0.000000e+00> : vector<16x32xf32>
    %13 = tpu.matmul %11, %12, %cst {dimension_numbers = #tpu.dot_dimension_numbers<[1], [0], [0], [1], [0, 0, 1, 1], [], []>} : vector<16x136xf32>, vector<136x32xf32>, vector<16x32xf32> -> vector<16x32xf32>
    %c136 = arith.constant 136 : index
    %c0_4 = arith.constant 0 : index
    %14 = vector.load %arg1[%c136, %c0_4] : memref<154x32xf32, #tpu.memory_space<vmem>>, vector<16x32xf32>
    %15 = arith.addf %13, %14 : vector<16x32xf32>
    %cst_5 = arith.constant dense<0.000000e+00> : vector<16xf32>
    %16 = vector.multi_reduction <add>, %15, %cst_5 [1] : vector<16x32xf32> to vector<16xf32>
    %17 = vector.shape_cast %16 : vector<16xf32> to vector<16x1xf32>
    %cst_6 = arith.constant 3.200000e+01 : f32
    %18 = vector.broadcast %cst_6 : f32 to vector<16x1xf32>
    %19 = arith.divf %17, %18 : vector<16x1xf32>
    %20 = vector.broadcast %19 : vector<16x1xf32> to vector<16x32xf32>
    %21 = arith.subf %15, %20 : vector<16x32xf32>
    %22 = arith.mulf %21, %21 : vector<16x32xf32>
    %cst_7 = arith.constant dense<0.000000e+00> : vector<16xf32>
    %23 = vector.multi_reduction <add>, %22, %cst_7 [1] : vector<16x32xf32> to vector<16xf32>
    %24 = vector.shape_cast %23 : vector<16xf32> to vector<16x1xf32>
    %cst_8 = arith.constant 3.200000e+01 : f32
    %25 = vector.broadcast %cst_8 : f32 to vector<16x1xf32>
    %26 = arith.divf %24, %25 : vector<16x1xf32>
    %27 = vector.broadcast %19 : vector<16x1xf32> to vector<16x32xf32>
    %28 = arith.subf %15, %27 : vector<16x32xf32>
    %cst_9 = arith.constant 9.99999996E-13 : f32
    %29 = vector.broadcast %cst_9 : f32 to vector<16x1xf32>
    %30 = arith.addf %26, %29 : vector<16x1xf32>
    %31 = math.rsqrt %30 : vector<16x1xf32>
    %32 = vector.broadcast %31 : vector<16x1xf32> to vector<16x32xf32>
    %33 = arith.mulf %28, %32 : vector<16x32xf32>
    %c152 = arith.constant 152 : index
    %c0_10 = arith.constant 0 : index
    %34 = vector.load %arg1[%c152, %c0_10] : memref<154x32xf32, #tpu.memory_space<vmem>>, vector<1x32xf32>
    %c153 = arith.constant 153 : index
    %c0_11 = arith.constant 0 : index
    %35 = vector.load %arg1[%c153, %c0_11] : memref<154x32xf32, #tpu.memory_space<vmem>>, vector<1x32xf32>
    %36 = vector.broadcast %34 : vector<1x32xf32> to vector<16x32xf32>
    %37 = arith.mulf %33, %36 : vector<16x32xf32>
    %38 = vector.broadcast %35 : vector<1x32xf32> to vector<16x32xf32>
    %39 = arith.addf %37, %38 : vector<16x32xf32>
    %c0_12 = arith.constant 0 : index
    %c0_13 = arith.constant 0 : index
    %40 = vector.load %arg2[%c0_12, %c0_13] : memref<16x32xf32, #tpu.memory_space<vmem>>, vector<16x32xf32>
    tpu.vector_store %arg2[%c0_12, %c0_13], %39 {strides = array<i32>} : memref<16x32xf32, #tpu.memory_space<vmem>>, vector<16x32xf32>,
    return
  }
}

</mosaic_0001>

<bundles_post_ra>
// kernel: tpu_custom_call.1
= control target key start
LH: loop header
LB: loop body
LE: loop exit
PB: predicated region body
PF: predicated region fallthrough
CT: control target
= control target key end

     0   :  { %v303_v3 = vmov 0   ;;  %v304_v4 = vmov 1   ;;  %v305_v9 = vmov 0.0|0.0   ;;  %s415_s0 = inlined_call_operand.vmem [shape: s32[16,2], index: 0, kind: input, shape index: {}]   ;;  %s416_s1 = inlined_call_operand.vmem [shape: f32[154,32], index: 1, kind: input, shape index: {}]   ;;  %s417_s2 = inlined_call_operand.hbm [shape: f32[16,32], index: 2, kind: output, shape index: {}]  }
   0x1   :  { %v12_v0 = vld [vmem:[%s415_s0] sm:$0xff]  ;;  %v13_v1 = vld [vmem:[%s415_s0 + $0x8] sm:$0xff]  ;;  %272 = vset.pattern.permute.xlu0 %v303_v3  ;;  %273 = vset.pattern.permute.xlu1 %v304_v4  ;;  %v53_v7 = vld [vmem:[%s416_s1 + $0x10] sm:$0xff] }
   0x2   :  { %v51_v2 = vld [vmem:[%s416_s1] sm:$0xff]  ;;  %v27_v5 = vadd.s32 128, %v12_v0  ;;  %v52_v6 = vld [vmem:[%s416_s1 + $0x8] sm:$0xff]  ;;  %v54_v8 = vld [vmem:[%s416_s1 + $0x18] sm:$0xff]  ;;  %18 = vperm.xlu0 %272, %v12_v0   ;;  %222 = vmatprep.subr.bf16.mxu0 %v305_v9  ;;  %v28_v11 = vadd.s32 128, %v13_v1 }
   0x3   :  { %v223_v10 = vpack.c.bf16 %v52_v6, %v51_v2  ;;  %246 = vmatprep.subr.bf16.mxu1 %v305_v9  ;;  %v226_v12 = vpack.c.bf16 %v54_v8, %v53_v7  ;;  %v55_v13 = vld [vmem:[%s416_s1 + $0x20] sm:$0xff]  ;;  %v56_v14 = vld [vmem:[%s416_s1 + $0x28] sm:$0xff] }
   0x4   :  { %30 = vperm.xlu1 %273, %v27_v5  }
   0x5   :  { %224 = vmatpush1.bf16.msra.mxu0 %v223_v10  ;;  %255 = vmatpush1.bf16.msra.mxu1 %v223_v10 }
   0x6   :  { %225 = vmatprep.subr.bf16.mxu0 %v305_v9  ;;  %247 = vmatprep.subr.bf16.mxu1 %v305_v9 }
   0x7   :  { %21 = vperm.xlu0 %272, %v13_v1  }
   0x8   :  { %7 = vsyncpa [#allocation3], 0  ;;  %33 = vperm.xlu1 %273, %v28_v11   ;;  %v229_v15 = vpack.c.bf16 %v56_v14, %v55_v13  ;;  %v57_v16 = vld [vmem:[%s416_s1 + $0x30] sm:$0xff]  ;;  %v58_v17 = vld [vmem:[%s416_s1 + $0x38] sm:$0xff]  ;;  %v306_v31 = vmov 0.0   ;;  %v14_v33 = vlaneseq  ;;  %vm70_vm4 = vcmask 64512  }
   0x9   :  { %227 = vmatpush1.bf16.msra.mxu0 %v226_v12  ;;  %256 = vmatpush1.bf16.msra.mxu1 %v226_v12  ;;  %v232_v18 = vpack.c.bf16 %v58_v17, %v57_v16  ;;  %v59_v19 = vld [vmem:[%s416_s1 + $0x40] sm:$0xff]  ;;  %v60_v20 = vld [vmem:[%s416_s1 + $0x48] sm:$0xff]  ;;  %v61_v22 = vld [vmem:[%s416_s1 + $0x50] sm:$0xff]  ;;  %v307_v41 = vmov 1.0   ;;  %vm152_vm13 = vcmask 261120   ;;  %s308_s25 = smov [#allocation2]  }
   0xa   :  { %228 = vmatprep.subr.bf16.mxu0 %v305_v9  ;;  %248 = vmatprep.subr.bf16.mxu1 %v305_v9  ;;  %v235_v21 = vpack.c.bf16 %v60_v20, %v59_v19  ;;  %v62_v23 = vld [vmem:[%s416_s1 + $0x58] sm:$0xff]  ;;  %v63_v25 = vld [vmem:[%s416_s1 + $0x60] sm:$0xff]  ;;  %v64_v26 = vld [vmem:[%s416_s1 + $0x68] sm:$0xff]  ;;  %v15_v34 = vand.u32 127, %v14_v33  ;;  %s201_s26 = sshll.u32 %s308_s25, 4  ;;  %s202_s26 = int_to_ptr.vmem [resolvable:$true] %s201_s26 }
   0xb   :  { %274 = vset.pattern.permute.xlu0 %v304_v4  ;;  %v238_v24 = vpack.c.bf16 %v62_v23, %v61_v22  ;;  %v241_v27 = vpack.c.bf16 %v64_v26, %v63_v25  ;;  %v65_v28 = vld [vmem:[%s416_s1 + $0x70] sm:$0xff]  ;;  %v66_v29 = vld [vmem:[%s416_s1 + $0x78] sm:$0xff]  ;;  %v67_v32 = vld [vmem:[%s416_s1 + $0x80] sm:$0xff]  ;;  %s279_s27 = scalar_lea.vmem %s202_s26, 256  ;;  %p284_p1 = scmp.lt.s32.totalorder %s202_s26, %s202_s26 }
   0xc   :  { %v244_v30 = vpack.c.bf16 %v66_v29, %v65_v28  ;;  %v16_v35 = vadd.s32 128, %v15_v34  ;;  %v68_v43 = vld [vmem:[%s416_s1 + $0x88] sm:$0xff]  ;;  %v69_v47 = vld [vmem:[%s416_s1 + $0x90] sm:$0xff]  ;;  %v220_v6 = vld [vmem:[%s416_s1 + $0x98] ss:$0 sm:$0xff]  ;;  %p280_p0 = scmp.ne.s32.totalorder %s202_s26, %s279_s27  ;;  %p285_p2 = scmp.lt.s32.totalorder %s279_s27, %s279_s27 }
   0xd   :  { %230 = vmatpush1.bf16.msra.mxu0 %v229_v15  ;;  %257 = vmatpush1.bf16.msra.mxu1 %v229_v15  ;;  %v221_v8 = vld [vmem:[%s416_s1 + $0x99] ss:$0 sm:$0xff] }
   0xe   :  { %231 = vmatprep.subr.bf16.mxu0 %v305_v9  ;;  %249 = vmatprep.subr.bf16.mxu1 %v305_v9  ;;  %p286_p3 = por %p285_p2, %p284_p1 }
  0x10   :  { %p287_p4 = pnand %p286_p3, %p280_p0 }
  0x11   :  { %233 = vmatpush1.bf16.msra.mxu0 %v232_v18  ;;  %258 = vmatpush1.bf16.msra.mxu1 %v232_v18 }
  0x12   :  { %234 = vmatprep.subr.bf16.mxu0 %v305_v9  ;;  %250 = vmatprep.subr.bf16.mxu1 %v305_v9 }
  0x15   :  { %236 = vmatpush1.bf16.msra.mxu0 %v235_v21  ;;  %259 = vmatpush1.bf16.msra.mxu1 %v235_v21 }
  0x16   :  { %237 = vmatprep.subr.bf16.mxu0 %v305_v9  ;;  %251 = vmatprep.subr.bf16.mxu1 %v305_v9 }
  0x19   :  { %239 = vmatpush1.bf16.msra.mxu0 %v238_v24  ;;  %260 = vmatpush1.bf16.msra.mxu1 %v238_v24 }
  0x1a   :  { %240 = vmatprep.subr.bf16.mxu0 %v305_v9  ;;  %252 = vmatprep.subr.bf16.mxu1 %v305_v9 }
  0x1d   :  { %242 = vmatpush1.bf16.msra.mxu0 %v241_v27  ;;  %261 = vmatpush1.bf16.msra.mxu1 %v241_v27 }
  0x1e   :  { %243 = vmatprep.subr.bf16.mxu0 %v305_v9  ;;  %253 = vmatprep.subr.bf16.mxu1 %v305_v9 }
  0x21   :  { %245 = vmatpush1.bf16.msra.mxu0 %v244_v30  ;;  %262 = vmatpush1.bf16.msra.mxu1 %v244_v30 }
  0x22   :  { %109 = vmatprep.subr.mxu0 %v306_v31  ;;  %254 = vmatprep.subr.mxu1 %v306_v31 }
  0x25   :  { %110 = vmatpush1.msra.mxu0 %v67_v32  ;;  %263 = vmatpush1.msra.mxu1 %v67_v32 }
  0x81   :  { %v19_v36 = vpop.permute.xlu0 %18 }
  0x82   :  { %vm24_vm0 = vcmp.eq.s32.totalorder %v16_v35, %v19_v36  ;;  %vm23_vm2 = vcmp.eq.s32.totalorder %v15_v34, %v19_v36 }
  0x83   :  { %v31_v37 = vpop.permute.xlu1 %30 }
  0x84   :  { %vm36_vm1 = vcmp.eq.s32.totalorder %v16_v35, %v31_v37  ;;  %vm35_vm3 = vcmp.eq.s32.totalorder %v15_v34, %v31_v37 }
  0x85   :  { %vm40_vm5 = vmor %vm24_vm0, %vm36_vm1 }
  0x86   :  { %v22_v38 = vpop.permute.xlu0 %21  ;;  %v213_v39 = vsel %vm40_vm5, 1.0, %v306_v31  ;;  %vm39_vm7 = vmor %vm23_vm2, %vm35_vm3 }
  0x87   :  { %vm26_vm6 = vcmp.eq.s32.totalorder %v16_v35, %v22_v38  ;;  %v34_v40 = vpop.permute.xlu1 %33  ;;  %216 = vmatprep.mubr.msk.f32.mxu0 %vm70_vm4, %v213_v39  ;;  %vm25_vm9 = vcmp.eq.s32.totalorder %v15_v34, %v22_v38 }
  0x88   :  { %vm38_vm8 = vcmp.eq.s32.totalorder %v16_v35, %v34_v40  ;;  %vm37_vm10 = vcmp.eq.s32.totalorder %v15_v34, %v34_v40  ;;  %217 = vmatmul.mubr.msk.f32.vlgmr.msra.gmra.mrb[0].mxu0 %vm39_vm7, %v307_v41 }
  0x89   :  { %vm42_vm11 = vmor %vm26_vm6, %vm38_vm8 }
  0x8a   :  { %v215_v42 = vsel %vm42_vm11, 1.0, %v306_v31  ;;  %vm41_vm12 = vmor %vm25_vm9, %vm37_vm10 }
  0x8b   :  { %218 = vmatprep.mubr.msk.f32.mxu1 %vm70_vm4, %v215_v42 }
  0x8c   :  { %219 = vmatmul.mubr.msk.f32.vlgmr.msra.gmra.mrb[0].mxu1 %vm41_vm12, %v307_v41 }
 0x15b   :  { %v143_v44 = vpop.f32.mrb[0].mxu0 }
 0x15c   :  { %v144_v45 = vadd.f32 %v143_v44, %v68_v43  ;;  %v145_v46 = vpop.f32.mrb[1].mxu0 }
 0x15e   :  { %v153_v48 = vsel %vm152_vm13, %v144_v45, 0.0 }
 0x15f   :  { %154 = vadd.xlane.f32.xlu0 %v153_v48  ;;  %v148_v49 = vpop.f32.mrb[0].mxu1 }
 0x160   :  { %v149_v50 = vadd.f32 %v148_v49, %v69_v47  ;;  %v150_v51 = vpop.f32.mrb[1].mxu1 }
 0x162   :  { %v156_v52 = vsel %vm152_vm13, %v149_v50, 0.0 }
 0x163   :  { %157 = vadd.xlane.f32.xlu1 %v156_v52 }
 0x1ec   :  { %v155_v53 = vpop.xlane.xlu0 %154 }
 0x1ed   :  { %v160_v54 = vmul.f32 0.03125, %v155_v53 }
 0x1ef   :  { %v162_v55 = vsub.f32 %v144_v45, %v160_v54 }
 0x1f0   :  { %v158_v56 = vpop.xlane.xlu1 %157 }
 0x1f1   :  { %v161_v57 = vmul.f32 0.03125, %v158_v56  ;;  %v164_v58 = vmul.f32 %v162_v55, %v162_v55 }
 0x1f3   :  { %v163_v59 = vsub.f32 %v149_v50, %v161_v57  ;;  %v166_v60 = vsel %vm152_vm13, %v164_v58, 0.0 }
 0x1f4   :  { %167 = vadd.xlane.f32.xlu0 %v166_v60 }
 0x1f5   :  { %v165_v61 = vmul.f32 %v163_v59, %v163_v59 }
 0x1f7   :  { %v169_v62 = vsel %vm152_vm13, %v165_v61, 0.0 }
 0x1f8   :  { %170 = vadd.xlane.f32.xlu0 %v169_v62 }
 0x281   :  { %v168_v63 = vpop.xlane.xlu0 %167 }
 0x282   :  { %v172_v0 = vmul.f32 0.03125, %v168_v63 }
 0x284   :  { %v174_v1 = vadd.f32 1e-12, %v172_v0 }
 0x285   :  { %v171_v2 = vpop.xlane.xlu0 %170 }
 0x286   :  { %275 = vrsqrt.f32 %v174_v1  ;;  %v173_v3 = vmul.f32 0.03125, %v171_v2 }
 0x288   :  { %v175_v4 = vadd.f32 1e-12, %v173_v3 }
 0x28a   :  { %277 = vrsqrt.f32 %v175_v4 }
 0x290   :  { %v276_v5 = vpop.eup %275 }
 0x291   :  { %v178_v7 = vmul.f32 %v276_v5, %v162_v55 }
 0x293   :  { %v186_v9 = vmul.f32 %v220_v6, %v178_v7 }
 0x294   :  { %v278_v10 = vpop.eup %277 }
 0x295   :  { %v179_v11 = vmul.f32 %v278_v10, %v163_v59  ;;  %v192_v12 = vadd.f32 %v221_v8, %v186_v9 }
 0x297   :  { %v187_v13 = vmul.f32 %v220_v6, %v179_v11  ;;  %194 = vst.msk [vmem:[#allocation2] sm:$0xff] %vm152_vm13, %v192_v12 }
 0x299   :  { %v193_v14 = vadd.f32 %v221_v8, %v187_v13 }
 0x29b   :  { %195 = vst.msk [vmem:[#allocation2 + $0x8] sm:$0xff] %vm152_vm13, %v193_v14 }
 0x29c   :  { %290 = shalt.err (!%p287_p4)
}
 0x29d   :  { %s291_s29 = scalar_lea.hbm %s417_s2, 256 }
 0x29e   :  { %p292_p5 = scmp.ne.s32.totalorder %s417_s2, %s291_s29  ;;  %p295_p6 = scmp.lt.u32.totalorder %s291_s29, %s417_s2 }
 0x2a0   :  { %p297_p7 = pnand %p295_p6, %p292_p5 }
 0x2a2   :  { %300 = shalt.err (!%p297_p7)
}
 0x2a3   :  { %s309_s6 = smov 128   ;;  %s310_s7 = smov 8  }
 0x2a4   :  { %207 = dma.vmem_to_hbm [thread:$0]  %s202_s26, 256, %s417_s2, [#allocation3], %s309_s6, %s309_s6, %s310_s7  }
 0x2a5   :  { %301 = dma.done.wait [#allocation3], 256  }
 0x2a6   :  { %302 = vsyncadd [#allocation3], 4294967040 }
 0x2a7   :  { %211 = vsyncpa [#allocation3], 1 }

</bundles_post_ra>
